<compile_context>
chip_gen: v7x
topology: tpu7x:2x2x1
jax: 0.10.0
libtpu: 0.0.40
codegen_flags: <defaults>
</compile_context>

<pallas_src>
import functools

import jax
import jax.numpy as jnp
from jax.experimental import pallas as pl
from jax.experimental.pallas import tpu as pltpu

LANE = 128
MAX_TILE_B = 8192          # rows; review-recommended ceiling
TILE_VMEM_FRACTION = 0.20  # fraction of physical VMEM spent on streaming tiles


def _round_up(x, m):
    return ((x + m - 1) // m) * m


def _pad_to(a, shape):
    return jnp.pad(a, [(0, t - s) for s, t in zip(a.shape, shape)])


# ---------------------------------------------------------------------------
# Kernel
# ---------------------------------------------------------------------------
def mlp_kernel(x_ref, w1_ref, b1_ref, w2_ref, b2_ref,
               w3_ref, b3_ref, w4_ref, b4_ref, o_ref, *, elementwise_bf16):
    """4-layer MLP on one (TILE_B, in_dim) batch tile.

    elementwise_bf16=True  -> bias-add/ReLU in bf16 (v6e/v7x bf16 VPU path).
    elementwise_bf16=False -> bias-add/ReLU in f32  (v5e, no bf16 VPU).
    MXU accumulation is always f32.
    """
    bf16 = jnp.bfloat16

    def layer(h_bf16, w_ref, b_ref, relu):
        acc = jnp.dot(h_bf16, w_ref[...], preferred_element_type=jnp.float32)
        if elementwise_bf16:
            h = acc.astype(bf16) + b_ref[...].astype(bf16)   # bf16 VPU path
            if relu:
                h = jnp.maximum(h, 0.0)
            return h
        h = acc + b_ref[...]                                  # f32 VPU path
        if relu:
            h = jnp.maximum(h, 0.0)
        return h.astype(bf16)

    # x tile -> bf16 for the MXU (no-op if the producer already emits bf16).
    h = x_ref[...].astype(bf16)
    h = layer(h, w1_ref, b1_ref, relu=True)    # Dropout = identity in eval
    h = layer(h, w2_ref, b2_ref, relu=True)    # Dropout = identity in eval
    h = layer(h, w3_ref, b3_ref, relu=True)
    h = layer(h, w4_ref, b4_ref, relu=False)
    o_ref[...] = h.astype(o_ref.dtype)         # lane-dense bf16 store


# ---------------------------------------------------------------------------
# Params
# ---------------------------------------------------------------------------
def xavier_normal(key, fan_in, fan_out, gain=0.1):
    # Matches torch.nn.init.xavier_normal_(w, gain=0.1).
    std = gain * (2.0 / (fan_in + fan_out)) ** 0.5
    # Stored transposed as (in, out) so the kernel computes x @ W + b.
    return std * jax.random.normal(key, (fan_in, fan_out), dtype=jnp.float32)


def init_params(input_dim, seq_len, pred_len, key):
    """Torch-equivalent f32 params (unpadded), transposed to (in, out)."""
    dims = [input_dim * seq_len, 128, 64, 32, pred_len]
    keys = jax.random.split(key, 4)
    params = []
    for i in range(4):
        w = xavier_normal(keys[i], dims[i], dims[i + 1])
        b = jnp.zeros((1, dims[i + 1]), dtype=jnp.float32)  # constant_(bias, 0)
        params.extend([w, b])
    return params


def prepare_params(params):
    """Zero-pad narrow layers to 128 lanes and cast weights to bf16.

    Zero padding is a mathematical no-op: padded output columns get zero
    weight + zero bias -> ReLU(0) = 0, and padded input rows multiply those
    zero activations.
    """
    w1, b1, w2, b2, w3, b3, w4, b4 = params
    out_pad = _round_up(w4.shape[1], LANE)
    bf16 = jnp.bfloat16
    return [
        w1.astype(bf16),                                  # (in_dim, 128)
        b1,                                               # (1, 128)   f32
        _pad_to(w2, (LANE, LANE)).astype(bf16),           # (128, 128)
        _pad_to(b2, (1, LANE)),                           # (1, 128)   f32
        _pad_to(w3, (LANE, LANE)).astype(bf16),           # (128, 128)
        _pad_to(b3, (1, LANE)),                           # (1, 128)   f32
        _pad_to(w4, (LANE, out_pad)).astype(bf16),        # (128, out_pad)
        _pad_to(b4, (1, out_pad)),                        # (1, out_pad) f32
    ]


# ---------------------------------------------------------------------------
# Hardware-aware sizing
# ---------------------------------------------------------------------------
def _vmem_capacity_bytes():
    """Physical VMEM per TensorCore; conservative (v7x) fallback if unknown."""
    try:
        cap = getattr(pltpu.get_tpu_info(), "vmem_capacity_bytes", None)
        if cap:
            return int(cap)
    except Exception:
        pass
    return 64 * 2**20


def _use_bf16_elementwise():
    """bf16 bias/ReLU on chips with a bf16 VPU (v6e/v7x); f32 on v5e/older."""
    try:
        kind = jax.devices()[0].device_kind.lower()
    except Exception:
        return False
    return not any(tag in kind for tag in ("v2", "v3", "v4", "v5"))


def _per_row_tile_bytes(in_dim, out_pad, x_itemsize):
    # Double-buffered x + out tiles plus headroom for the f32 accumulator /
    # bf16 activation copies the compiler keeps live per batch row.
    return (2 * in_dim * x_itemsize        # x tile, 2 pipeline buffers
            + 2 * out_pad * 2              # bf16 out tile, 2 pipeline buffers
            + 4 * LANE * 4 + 2 * LANE * 2)  # activation/accumulator headroom


def _choose_tile_b(B, in_dim, out_pad, x_itemsize, vmem_cap):
    """Derive the batch tile from a VMEM budget (per performance review)."""
    b_pad8 = _round_up(B, 8)
    budget = max(2 * 2**20, int(vmem_cap * TILE_VMEM_FRACTION))
    tile_b = budget // _per_row_tile_bytes(in_dim, out_pad, x_itemsize)
    tile_b = min(tile_b, MAX_TILE_B, b_pad8)
    if b_pad8 >= 16:
        # At least 2 grid steps so ("parallel",) can split batch tiles across
        # v7x's two TensorCores; harmless extra ~0.35 µs step elsewhere.
        tile_b = min(tile_b, _round_up(pl.cdiv(b_pad8, 2), 8))
    tile_b = max(8, (tile_b // 8) * 8)
    if tile_b >= 16:
        tile_b = (tile_b // 16) * 16       # bf16-friendly sublane packing
    return tile_b, b_pad8


# ---------------------------------------------------------------------------
# Forward
# ---------------------------------------------------------------------------
def simple_mse_forward(x, kparams, pred_len, *, elementwise_bf16=None):
    """x: (B, L, C) float32 (or bfloat16)  ->  (B, pred_len, 1) float32."""
    if elementwise_bf16 is None:
        elementwise_bf16 = _use_bf16_elementwise()

    B, L, C = x.shape
    in_dim = L * C
    out_pad = kparams[-1].shape[-1]           # padded output lanes (=128)
    x_itemsize = jnp.dtype(x.dtype).itemsize

    vmem_cap = _vmem_capacity_bytes()
    tile_b, b_pad8 = _choose_tile_b(B, in_dim, out_pad, x_itemsize, vmem_cap)

    x_flat = x.reshape(B, in_dim)             # same row-major flatten as torch
    if b_pad8 != B:
        # Pad only to the next sublane multiple (<= 7 rows). A non-dividing
        # last grid block overruns b_pad8 and relies on Pallas partial-block
        # masking; garbage padded rows never contaminate valid rows (row-wise
        # independent matmul) and are sliced off below.
        x_flat = jnp.pad(x_flat, ((0, b_pad8 - B), (0, 0)))

    grid = (pl.cdiv(b_pad8, tile_b),)

    def resident(shape):
        # Constant index_map -> Pallas DMAs these once and keeps them resident.
        return pl.BlockSpec(shape, lambda i: (0, 0))

    in_specs = [pl.BlockSpec((tile_b, in_dim), lambda i: (i, 0))]
    in_specs += [resident(p.shape) for p in kparams]
    out_specs = pl.BlockSpec((tile_b, out_pad), lambda i: (i, 0))

    # VMEM budget: streaming tiles + resident weights (x2 buffers) + slack,
    # clamped to <= 75% of physical VMEM (v7x has only 64 MiB per TC).
    param_bytes = sum(p.size * p.dtype.itemsize for p in kparams)
    est_bytes = (tile_b * _per_row_tile_bytes(in_dim, out_pad, x_itemsize)
                 + 2 * param_bytes + (2 << 20))
    vmem_limit = int(min(int(0.75 * vmem_cap), max(16 * 2**20, 2 * est_bytes)))

    flops = 2 * b_pad8 * (in_dim * LANE + LANE * LANE + LANE * LANE
                          + LANE * out_pad)
    bytes_accessed = (x_flat.size * x_itemsize + param_bytes
                      + b_pad8 * out_pad * 2)

    kernel = functools.partial(mlp_kernel, elementwise_bf16=elementwise_bf16)

    out = pl.pallas_call(
        kernel,
        out_shape=jax.ShapeDtypeStruct((b_pad8, out_pad), jnp.bfloat16),
        grid=grid,
        in_specs=in_specs,
        out_specs=out_specs,
        compiler_params=pltpu.CompilerParams(
            dimension_semantics=("parallel",),
            vmem_limit_bytes=vmem_limit,
        ),
        cost_estimate=pl.CostEstimate(
            flops=flops, transcendentals=0, bytes_accessed=bytes_accessed),
    )(x_flat, *kparams)

    # Drop batch padding / lane padding, restore f32, unsqueeze(-1).
    return out[:B, :pred_len].astype(jnp.float32)[..., None]


# ---------------------------------------------------------------------------
# References
# ---------------------------------------------------------------------------
def reference_forward_kernel_math(x, kparams, pred_len, elementwise_bf16):
    """Pure-JAX reference reproducing the kernel's bf16/padded math."""
    B, L, C = x.shape
    bf16 = jnp.bfloat16
    h = x.reshape(B, L * C).astype(bf16)
    w1, b1, w2, b2, w3, b3, w4, b4 = kparams

    def layer(h, w, b, relu):
        acc = jnp.dot(h, w, preferred_element_type=jnp.float32)
        if elementwise_bf16:
            out = acc.astype(bf16) + b.astype(bf16)
            if relu:
                out = jnp.maximum(out, 0.0)
            return out
        out = acc + b
        if relu:
            out = jnp.maximum(out, 0.0)
        return out.astype(bf16)

    h = layer(h, w1, b1, True)
    h = layer(h, w2, b2, True)
    h = layer(h, w3, b3, True)
    h = layer(h, w4, b4, False)                     # already bf16
    return h[:, :pred_len].astype(jnp.float32)[..., None]


def reference_forward_f32(x, params):
    """Pure-JAX full-f32 reference matching the PyTorch module (eval mode)."""
    B, L, C = x.shape
    h = x.reshape(B, L * C)
    w1, b1, w2, b2, w3, b3, w4, b4 = params
    h = jnp.maximum(h @ w1 + b1, 0.0)
    h = jnp.maximum(h @ w2 + b2, 0.0)
    h = jnp.maximum(h @ w3 + b3, 0.0)
    return (h @ w4 + b4)[..., None]


# ---------------------------------------------------------------------------
if __name__ == "__main__":
    # Small shapes consistent with the module's forward: x is (B, seq_len, input_dim).
    B, seq_len, input_dim, pred_len = 2, 8, 4, 8

    key = jax.random.PRNGKey(0)
    k_x, k_p = jax.random.split(key)

    x = jax.random.normal(k_x, (B, seq_len, input_dim), dtype=jnp.float32)
    params = init_params(input_dim, seq_len, pred_len, k_p)
    kparams = prepare_params(params)

    elementwise_bf16 = _use_bf16_elementwise()
    out = simple_mse_forward(x, kparams, pred_len,
                             elementwise_bf16=elementwise_bf16)
    out = jax.block_until_ready(out)
    assert out.shape == (B, pred_len, 1), out.shape

    # Check vs a pure-JAX reference doing the identical bf16/f32 math
    # (loosened per review: MXU vs XLA dot accumulation order may differ).
    ref_exact = reference_forward_kernel_math(x, kparams, pred_len,
                                              elementwise_bf16)
    assert jnp.allclose(out, ref_exact, atol=1e-5, rtol=2e-2), \
        "mismatch vs bf16-math reference"

    # Loose sanity check vs the full-f32 torch-equivalent reference
    # (bf16 weights/activations/output -> ~1% relative difference expected).
    ref_f32 = reference_forward_f32(x, params)
    assert jnp.allclose(out, ref_f32, atol=1e-5, rtol=2e-1), \
        "mismatch vs f32 reference"

    # TODO(synk): training-mode Dropout(0.1) would need pltpu.prng_seed /
    # prng_random_bits; eval-mode (identity) semantics are implemented here.
    print("KERNEL_OK")
</pallas_src>

<mosaic_0001>
module attributes {stable_mosaic.version = 11 : i64} {
  func.func @mlp_kernel(%arg0: i32, %arg1: memref<8x32xf32, #tpu.memory_space<vmem>>, %arg2: memref<32x128xbf16, #tpu.memory_space<vmem>>, %arg3: memref<1x128xf32, #tpu.memory_space<vmem>>, %arg4: memref<128x128xbf16, #tpu.memory_space<vmem>>, %arg5: memref<1x128xf32, #tpu.memory_space<vmem>>, %arg6: memref<128x128xbf16, #tpu.memory_space<vmem>>, %arg7: memref<1x128xf32, #tpu.memory_space<vmem>>, %arg8: memref<128x128xbf16, #tpu.memory_space<vmem>>, %arg9: memref<1x128xf32, #tpu.memory_space<vmem>>, %arg10: memref<8x128xbf16, #tpu.memory_space<vmem>>) attributes {dimension_semantics = [#tpu.dimension_semantics<parallel>], iteration_bounds = array<i64: 1>, scalar_prefetch = 0 : i64, scratch_operands = 0 : i64, tpu.core_type = #tpu.core_type<tc>, window_params = [{transform_indices = @transform_0, window_bounds = array<i64: 8, 32>}, {pipeline_mode = #tpu.pipeline_mode<synchronous>, transform_indices = @transform_1, window_bounds = array<i64: 32, 128>}, {pipeline_mode = #tpu.pipeline_mode<synchronous>, transform_indices = @transform_2, window_bounds = array<i64: 1, 128>}, {pipeline_mode = #tpu.pipeline_mode<synchronous>, transform_indices = @transform_3, window_bounds = array<i64: 128, 128>}, {pipeline_mode = #tpu.pipeline_mode<synchronous>, transform_indices = @transform_4, window_bounds = array<i64: 1, 128>}, {pipeline_mode = #tpu.pipeline_mode<synchronous>, transform_indices = @transform_5, window_bounds = array<i64: 128, 128>}, {pipeline_mode = #tpu.pipeline_mode<synchronous>, transform_indices = @transform_6, window_bounds = array<i64: 1, 128>}, {pipeline_mode = #tpu.pipeline_mode<synchronous>, transform_indices = @transform_7, window_bounds = array<i64: 128, 128>}, {pipeline_mode = #tpu.pipeline_mode<synchronous>, transform_indices = @transform_8, window_bounds = array<i64: 1, 128>}, {transform_indices = @transform_9, window_bounds = array<i64: 8, 128>}]} {
    %c0 = arith.constant 0 : index
    %c0_0 = arith.constant 0 : index
    %0 = vector.load %arg1[%c0, %c0_0] : memref<8x32xf32, #tpu.memory_space<vmem>>, vector<8x32xf32>
    %1 = arith.truncf %0 : vector<8x32xf32> to vector<8x32xbf16>
    %c0_1 = arith.constant 0 : index
    %c0_2 = arith.constant 0 : index
    %2 = vector.load %arg2[%c0_1, %c0_2] : memref<32x128xbf16, #tpu.memory_space<vmem>>, vector<32x128xbf16>
    %cst = arith.constant dense<0.000000e+00> : vector<8x128xf32>
    %3 = tpu.matmul %1, %2, %cst {dimension_numbers = #tpu.dot_dimension_numbers<[1], [0], [0], [1], [0, 0, 1, 1], [], []>} : vector<8x32xbf16>, vector<32x128xbf16>, vector<8x128xf32> -> vector<8x128xf32>
    %4 = arith.truncf %3 : vector<8x128xf32> to vector<8x128xbf16>
    %c0_3 = arith.constant 0 : index
    %c0_4 = arith.constant 0 : index
    %5 = vector.load %arg3[%c0_3, %c0_4] : memref<1x128xf32, #tpu.memory_space<vmem>>, vector<1x128xf32>
    %6 = arith.truncf %5 : vector<1x128xf32> to vector<1x128xbf16>
    %7 = vector.broadcast %6 : vector<1x128xbf16> to vector<8x128xbf16>
    %8 = arith.addf %4, %7 : vector<8x128xbf16>
    %cst_5 = arith.constant 0.000000e+00 : bf16
    %9 = vector.broadcast %cst_5 : bf16 to vector<8x128xbf16>
    %10 = arith.maximumf %8, %9 : vector<8x128xbf16>
    %c0_6 = arith.constant 0 : index
    %c0_7 = arith.constant 0 : index
    %11 = vector.load %arg4[%c0_6, %c0_7] : memref<128x128xbf16, #tpu.memory_space<vmem>>, vector<128x128xbf16>
    %cst_8 = arith.constant dense<0.000000e+00> : vector<8x128xf32>
    %12 = tpu.matmul %10, %11, %cst_8 {dimension_numbers = #tpu.dot_dimension_numbers<[1], [0], [0], [1], [0, 0, 1, 1], [], []>} : vector<8x128xbf16>, vector<128x128xbf16>, vector<8x128xf32> -> vector<8x128xf32>
    %13 = arith.truncf %12 : vector<8x128xf32> to vector<8x128xbf16>
    %c0_9 = arith.constant 0 : index
    %c0_10 = arith.constant 0 : index
    %14 = vector.load %arg5[%c0_9, %c0_10] : memref<1x128xf32, #tpu.memory_space<vmem>>, vector<1x128xf32>
    %15 = arith.truncf %14 : vector<1x128xf32> to vector<1x128xbf16>
    %16 = vector.broadcast %15 : vector<1x128xbf16> to vector<8x128xbf16>
    %17 = arith.addf %13, %16 : vector<8x128xbf16>
    %cst_11 = arith.constant 0.000000e+00 : bf16
    %18 = vector.broadcast %cst_11 : bf16 to vector<8x128xbf16>
    %19 = arith.maximumf %17, %18 : vector<8x128xbf16>
    %c0_12 = arith.constant 0 : index
    %c0_13 = arith.constant 0 : index
    %20 = vector.load %arg6[%c0_12, %c0_13] : memref<128x128xbf16, #tpu.memory_space<vmem>>, vector<128x128xbf16>
    %cst_14 = arith.constant dense<0.000000e+00> : vector<8x128xf32>
    %21 = tpu.matmul %19, %20, %cst_14 {dimension_numbers = #tpu.dot_dimension_numbers<[1], [0], [0], [1], [0, 0, 1, 1], [], []>} : vector<8x128xbf16>, vector<128x128xbf16>, vector<8x128xf32> -> vector<8x128xf32>
    %22 = arith.truncf %21 : vector<8x128xf32> to vector<8x128xbf16>
    %c0_15 = arith.constant 0 : index
    %c0_16 = arith.constant 0 : index
    %23 = vector.load %arg7[%c0_15, %c0_16] : memref<1x128xf32, #tpu.memory_space<vmem>>, vector<1x128xf32>
    %24 = arith.truncf %23 : vector<1x128xf32> to vector<1x128xbf16>
    %25 = vector.broadcast %24 : vector<1x128xbf16> to vector<8x128xbf16>
    %26 = arith.addf %22, %25 : vector<8x128xbf16>
    %cst_17 = arith.constant 0.000000e+00 : bf16
    %27 = vector.broadcast %cst_17 : bf16 to vector<8x128xbf16>
    %28 = arith.maximumf %26, %27 : vector<8x128xbf16>
    %c0_18 = arith.constant 0 : index
    %c0_19 = arith.constant 0 : index
    %29 = vector.load %arg8[%c0_18, %c0_19] : memref<128x128xbf16, #tpu.memory_space<vmem>>, vector<128x128xbf16>
    %cst_20 = arith.constant dense<0.000000e+00> : vector<8x128xf32>
    %30 = tpu.matmul %28, %29, %cst_20 {dimension_numbers = #tpu.dot_dimension_numbers<[1], [0], [0], [1], [0, 0, 1, 1], [], []>} : vector<8x128xbf16>, vector<128x128xbf16>, vector<8x128xf32> -> vector<8x128xf32>
    %31 = arith.truncf %30 : vector<8x128xf32> to vector<8x128xbf16>
    %c0_21 = arith.constant 0 : index
    %c0_22 = arith.constant 0 : index
    %32 = vector.load %arg9[%c0_21, %c0_22] : memref<1x128xf32, #tpu.memory_space<vmem>>, vector<1x128xf32>
    %33 = arith.truncf %32 : vector<1x128xf32> to vector<1x128xbf16>
    %34 = vector.broadcast %33 : vector<1x128xbf16> to vector<8x128xbf16>
    %35 = arith.addf %31, %34 : vector<8x128xbf16>
    %c0_23 = arith.constant 0 : index
    %c0_24 = arith.constant 0 : index
    %36 = vector.load %arg10[%c0_23, %c0_24] : memref<8x128xbf16, #tpu.memory_space<vmem>>, vector<8x128xbf16>
    tpu.vector_store %arg10[%c0_23, %c0_24], %35 {strides = array<i32>} : memref<8x128xbf16, #tpu.memory_space<vmem>>, vector<8x128xbf16>,
    return
  }
  func.func @transform_0(%arg0: i32) -> (i32, i32) {
    %c0_i32 = arith.constant 0 : i32
    %c0_i32_0 = arith.constant 0 : i32
    return %arg0, %c0_i32 : i32, i32
  }
  func.func @transform_1(%arg0: i32) -> (i32, i32) {
    %c0_i32 = arith.constant 0 : i32
    %c0_i32_0 = arith.constant 0 : i32
    %c0_i32_1 = arith.constant 0 : i32
    return %c0_i32, %c0_i32_0 : i32, i32
  }
  func.func @transform_2(%arg0: i32) -> (i32, i32) {
    %c0_i32 = arith.constant 0 : i32
    %c0_i32_0 = arith.constant 0 : i32
    %c0_i32_1 = arith.constant 0 : i32
    return %c0_i32, %c0_i32_0 : i32, i32
  }
  func.func @transform_3(%arg0: i32) -> (i32, i32) {
    %c0_i32 = arith.constant 0 : i32
    %c0_i32_0 = arith.constant 0 : i32
    %c0_i32_1 = arith.constant 0 : i32
    return %c0_i32, %c0_i32_0 : i32, i32
  }
  func.func @transform_4(%arg0: i32) -> (i32, i32) {
    %c0_i32 = arith.constant 0 : i32
    %c0_i32_0 = arith.constant 0 : i32
    %c0_i32_1 = arith.constant 0 : i32
    return %c0_i32, %c0_i32_0 : i32, i32
  }
  func.func @transform_5(%arg0: i32) -> (i32, i32) {
    %c0_i32 = arith.constant 0 : i32
    %c0_i32_0 = arith.constant 0 : i32
    %c0_i32_1 = arith.constant 0 : i32
    return %c0_i32, %c0_i32_0 : i32, i32
  }
  func.func @transform_6(%arg0: i32) -> (i32, i32) {
    %c0_i32 = arith.constant 0 : i32
    %c0_i32_0 = arith.constant 0 : i32
    %c0_i32_1 = arith.constant 0 : i32
    return %c0_i32, %c0_i32_0 : i32, i32
  }
  func.func @transform_7(%arg0: i32) -> (i32, i32) {
    %c0_i32 = arith.constant 0 : i32
    %c0_i32_0 = arith.constant 0 : i32
    %c0_i32_1 = arith.constant 0 : i32
    return %c0_i32, %c0_i32_0 : i32, i32
  }
  func.func @transform_8(%arg0: i32) -> (i32, i32) {
    %c0_i32 = arith.constant 0 : i32
    %c0_i32_0 = arith.constant 0 : i32
    %c0_i32_1 = arith.constant 0 : i32
    return %c0_i32, %c0_i32_0 : i32, i32
  }
  func.func @transform_9(%arg0: i32) -> (i32, i32) {
    %c0_i32 = arith.constant 0 : i32
    %c0_i32_0 = arith.constant 0 : i32
    return %arg0, %c0_i32 : i32, i32
  }
}

</mosaic_0001>

<bundles_post_ra>
// kernel: tpu_custom_call.1
= control target key start
LH: loop header
LB: loop body
LE: loop exit
PB: predicated region body
PF: predicated region fallthrough
CT: control target
= control target key end

     0   :  { %14 = vsyncpa [#allocation3], 0  ;;  %s1038_s0 = inlined_call_operand.hbm [shape: f32[8,32], index: 0, kind: input, shape index: {}]   ;;  %s1039_s1 = inlined_call_operand.hbm [shape: bf16[32,128], index: 1, kind: input, shape index: {}]   ;;  %s1040_s2 = inlined_call_operand.vmem [shape: f32[1,128], index: 2, kind: input, shape index: {}]   ;;  %s1041_s3 = inlined_call_operand.hbm [shape: bf16[128,128], index: 3, kind: input, shape index: {}]   ;;  %s1042_s4 = inlined_call_operand.vmem [shape: f32[1,128], index: 4, kind: input, shape index: {}]   ;;  %s1043_s5 = inlined_call_operand.hbm [shape: bf16[128,128], index: 5, kind: input, shape index: {}]   ;;  %s1044_s6 = inlined_call_operand.vmem [shape: f32[1,128], index: 6, kind: input, shape index: {}]   ;;  %s1045_s7 = inlined_call_operand.hbm [shape: bf16[128,128], index: 7, kind: input, shape index: {}]   ;;  %s1046_s8 = inlined_call_operand.vmem [shape: f32[1,128], index: 8, kind: input, shape index: {}]   ;;  %s1047_s9 = inlined_call_operand.hbm [shape: bf16[8,128], index: 9, kind: output, shape index: {}]  }
   0x1   :  { %15 = vsyncpa [#allocation6], 0 }
   0x2   :  { %16 = vsyncpa [#allocation9], 0 }
   0x3   :  { %17 = vsyncpa [#allocation4], 0  ;;  %s841_s30 = smov [#allocation5]   ;;  %s701_s13 = scalar_lea.hbm %s1039_s1, 256 }
   0x4   :  { %s33_s10 = sshll.u32 %s841_s30, 4  ;;  %p702_p0 = scmp.ne.s32.totalorder %s1039_s1, %s701_s13  ;;  %s34_s10 = int_to_ptr.vmem [resolvable:$true] %s33_s10 }
   0x5   :  { %p705_p1 = scmp.lt.u32.totalorder %s701_s13, %s1039_s1 }
   0x7   :  { %p707_p2 = pnand %p705_p1, %p702_p0 }
   0x9   :  { %710 = shalt.err (!%p707_p2)
}
   0xa   :  { %s711_s18 = scalar_lea.vmem %s34_s10, 256  ;;  %p716_p4 = scmp.lt.s32.totalorder %s34_s10, %s34_s10 }
   0xb   :  { %p712_p3 = scmp.ne.s32.totalorder %s34_s10, %s711_s18  ;;  %p717_p5 = scmp.lt.s32.totalorder %s711_s18, %s711_s18 }
   0xd   :  { %p718_p6 = por %p717_p5, %p716_p4 }
   0xf   :  { %p719_p7 = pnand %p718_p6, %p712_p3 }
  0x11   :  { %722 = shalt.err (!%p719_p7)
}
  0x12   :  { %s842_s19 = smov 64   ;;  %s843_s20 = smov 4  }
  0x13   :  { %39 = dma.hbm_to_vmem [thread:$0]  %s1039_s1, 256, %s34_s10, [#allocation6], %s842_s19, %s842_s19, %s843_s20  }
  0x14   :  { %s844_s23 = smov [#allocation8]   ;;  %s845_s25 = smov [#allocation2]  }
  0x15   :  { %s61_s24 = sshll.u32 %s844_s23, 4  ;;  %s24_s26 = sshll.u32 %s845_s25, 4  ;;  %s62_s24 = int_to_ptr.vmem [resolvable:$true] %s61_s24  ;;  %s25_s26 = int_to_ptr.vmem [resolvable:$true] %s24_s26 }
  0x16   :  { %s723_s29 = scalar_lea.hbm %s1043_s5, 1024 }
  0x17   :  { %p724_p8 = scmp.ne.s32.totalorder %s1043_s5, %s723_s29  ;;  %p727_p9 = scmp.lt.u32.totalorder %s723_s29, %s1043_s5 }
  0x19   :  { %p729_p10 = pnand %p727_p9, %p724_p8 }
  0x1b   :  { %732 = shalt.err (!%p729_p10)
}
  0x1c   :  { %s733_s1 = scalar_lea.vmem %s62_s24, 1024  ;;  %p738_p12 = scmp.lt.s32.totalorder %s62_s24, %s62_s24 }
  0x1d   :  { %p734_p11 = scmp.ne.s32.totalorder %s62_s24, %s733_s1  ;;  %p739_p13 = scmp.lt.s32.totalorder %s733_s1, %s733_s1 }
  0x1f   :  { %p740_p0 = por %p739_p13, %p738_p12 }
  0x21   :  { %p741_p1 = pnand %p740_p0, %p734_p11 }
  0x23   :  { %744 = shalt.err (!%p741_p1)
}
  0x24   :  { %67 = dma.hbm_to_vmem [thread:$0]  %s1043_s5, 1024, %s62_s24, [#allocation9], %s842_s19, %s842_s19, %s843_s20  }
  0x25   :  { %s745_s17 = scalar_lea.hbm %s1038_s0, 128 }
  0x26   :  { %p746_p2 = scmp.ne.s32.totalorder %s1038_s0, %s745_s17  ;;  %p749_p3 = scmp.lt.u32.totalorder %s745_s17, %s1038_s0 }
  0x28   :  { %p751_p4 = pnand %p749_p3, %p746_p2 }
  0x2a   :  { %754 = shalt.err (!%p751_p4)
}
  0x2b   :  { %s755_s25 = scalar_lea.vmem %s25_s26, 128  ;;  %p760_p6 = scmp.lt.s32.totalorder %s25_s26, %s25_s26 }
  0x2c   :  { %p756_p5 = scmp.ne.s32.totalorder %s25_s26, %s755_s25  ;;  %p761_p7 = scmp.lt.s32.totalorder %s755_s25, %s755_s25 }
  0x2e   :  { %p762_p8 = por %p761_p7, %p760_p6 }
  0x30   :  { %p763_p9 = pnand %p762_p8, %p756_p5 }
  0x32   :  { %766 = shalt.err (!%p763_p9)
}
  0x33   :  { %27 = dma.hbm_to_vmem [thread:$0]  %s1038_s0, 128, %s25_s26, [#allocation3]  }
  0x34   :  { %s846_s27 = smov [#allocation7]   ;;  %s847_s29 = smov [#allocation10]  }
  0x35   :  { %s47_s28 = sshll.u32 %s846_s27, 4  ;;  %s75_s30 = sshll.u32 %s847_s29, 4  ;;  %s48_s28 = int_to_ptr.vmem [resolvable:$true] %s47_s28  ;;  %s76_s30 = int_to_ptr.vmem [resolvable:$true] %s75_s30 }
  0x36   :  { %s767_s13 = scalar_lea.hbm %s1041_s3, 1024 }
  0x37   :  { %p768_p10 = scmp.ne.s32.totalorder %s1041_s3, %s767_s13  ;;  %p771_p11 = scmp.lt.u32.totalorder %s767_s13, %s1041_s3 }
  0x39   :  { %p773_p12 = pnand %p771_p11, %p768_p10 }
  0x3b   :  { %776 = shalt.err (!%p773_p12)
}
  0x3c   :  { %s777_s0 = scalar_lea.vmem %s48_s28, 1024  ;;  %p782_p0 = scmp.lt.s32.totalorder %s48_s28, %s48_s28 }
  0x3d   :  { %p778_p13 = scmp.ne.s32.totalorder %s48_s28, %s777_s0  ;;  %p783_p1 = scmp.lt.s32.totalorder %s777_s0, %s777_s0 }
  0x3f   :  { %p784_p2 = por %p783_p1, %p782_p0 }
  0x41   :  { %p785_p3 = pnand %p784_p2, %p778_p13 }
  0x43   :  { %788 = shalt.err (!%p785_p3)
}
  0x44   :  { %53 = dma.hbm_to_vmem [thread:$0]  %s1041_s3, 1024, %s48_s28, [#allocation6], %s842_s19, %s842_s19, %s843_s20  }
  0x45   :  { %s789_s21 = scalar_lea.hbm %s1045_s7, 1024 }
  0x46   :  { %p790_p4 = scmp.ne.s32.totalorder %s1045_s7, %s789_s21  ;;  %p793_p5 = scmp.lt.u32.totalorder %s789_s21, %s1045_s7 }
  0x48   :  { %p795_p6 = pnand %p793_p5, %p790_p4 }
  0x4a   :  { %798 = shalt.err (!%p795_p6)
}
  0x4b   :  { %s799_s24 = scalar_lea.vmem %s76_s30, 1024  ;;  %p804_p8 = scmp.lt.s32.totalorder %s76_s30, %s76_s30 }
  0x4c   :  { %p800_p7 = scmp.ne.s32.totalorder %s76_s30, %s799_s24  ;;  %p805_p9 = scmp.lt.s32.totalorder %s799_s24, %s799_s24 }
  0x4e   :  { %p806_p10 = por %p805_p9, %p804_p8 }
  0x50   :  { %p807_p11 = pnand %p806_p10, %p800_p7 }
  0x52   :  { %810 = shalt.err (!%p807_p11)
}
  0x53   :  { %81 = dma.hbm_to_vmem [thread:$0]  %s1045_s7, 1024, %s76_s30, [#allocation9], %s842_s19, %s842_s19, %s843_s20  }
  0x54   :  { %833 = dma.done.wait [#allocation3], 128  }
  0x55   :  { %834 = vsyncadd [#allocation3], 4294967168 }
  0x56   :  { %835 = dma.done.wait [#allocation6], 1280  }
  0x57   :  { %836 = vsyncadd [#allocation6], 4294966016 }
  0x58   :  { %837 = dma.done.wait [#allocation9], 2048  }
  0x59   :  { %838 = vsyncadd [#allocation9], 4294965248  ;;  %v848_v0 = vmov 0.0   ;;  %vm849_vm0 = vmmov 0   ;;  %v675_v1 = vld [vmem:[#allocation5] sm:$0xff]   ;;  %v676_v2 = vld [vmem:[#allocation5 + $0x8] sm:$0xff]   ;;  %v168_v19 = vlaneseq }
  0x5a   :  { %596 = vmatprep.subr.bf16.mxu0 %v848_v0  ;;  %600 = vmatprep.mubr.msk.bf16.mxu0 %vm849_vm0, %v848_v0  ;;  %v100_v3 = vld [vmem:[#allocation2] sm:$0xff]  ;;  %v677_v4 = vld [vmem:[#allocation7] sm:$0xff]   ;;  %vm118_vm1 = vcmask 261120   ;;  %v679_v7 = vld [vmem:[#allocation7 + $0x10] sm:$0xff]   ;;  %v850_v32 = vmov 0  }
  0x5b   :  { %604 = vmatprep.subr.bf16.mxu1 %v848_v0  ;;  %620 = vmatprep.mubr.msk.bf16.mxu1 %vm849_vm0, %v848_v0  ;;  %v101_v5 = vpack.c.bf16 %v100_v3, %v100_v3  ;;  %v678_v6 = vld [vmem:[#allocation7 + $0x8] sm:$0xff]   ;;  %v680_v8 = vld [vmem:[#allocation7 + $0x18] sm:$0xff]   ;;  %v681_v9 = vld [vmem:[#allocation7 + $0x20] sm:$0xff]   ;;  %v169_v22 = vshrl.u32 %v168_v19, 7 }
  0x5c   :  { %597 = vmatpush3.bf16.msra.mxu0 %v675_v1  ;;  %605 = vmatpush3.bf16.msra.mxu1 %v677_v4  ;;  %v682_v10 = vld [vmem:[#allocation7 + $0x28] sm:$0xff]   ;;  %v683_v11 = vld [vmem:[#allocation7 + $0x30] sm:$0xff]   ;;  %v684_v12 = vld [vmem:[#allocation7 + $0x38] sm:$0xff]  }
  0x5d   :  { %598 = vmatprep.subr.bf16.mxu0 %v848_v0  ;;  %606 = vmatprep.subr.bf16.mxu1 %v848_v0  ;;  %v685_v13 = vld [vmem:[#allocation8] sm:$0xff]   ;;  %v686_v14 = vld [vmem:[#allocation8 + $0x8] sm:$0xff]   ;;  %v687_v15 = vld [vmem:[#allocation8 + $0x10] sm:$0xff]   ;;  %v1001_v24 = vsub.s32 0, %v169_v22 }
  0x5e   :  { %v688_v16 = vld [vmem:[#allocation8 + $0x18] sm:$0xff]   ;;  %v689_v17 = vld [vmem:[#allocation8 + $0x20] sm:$0xff]   ;;  %v690_v18 = vld [vmem:[#allocation8 + $0x28] sm:$0xff]  }
  0x5f   :  { %v163_v20 = vld [vmem:[%s1040_s2] sm:$0x1]  ;;  %v691_v34 = vld [vmem:[#allocation8 + $0x30] sm:$0xff]   ;;  %v692_v35 = vld [vmem:[#allocation8 + $0x38] sm:$0xff]  }
  0x60   :  { %599 = vmatpush3.bf16.msra.mxu0 %v676_v2  ;;  %607 = vmatpush3.bf16.msra.mxu1 %v678_v6  ;;  %v164_v21 = vpack.c.bf16 %v163_v20, %v163_v20  ;;  %v693_v36 = vld [vmem:[#allocation10] sm:$0xff]   ;;  %v694_v37 = vld [vmem:[#allocation10 + $0x8] sm:$0xff]   ;;  %v695_v38 = vld [vmem:[#allocation10 + $0x10] sm:$0xff]  }
  0x61   :  { %624 = vmatprep.subr.bf16.mxu0 %v848_v0  ;;  %608 = vmatprep.subr.bf16.mxu1 %v848_v0  ;;  %v696_v39 = vld [vmem:[#allocation10 + $0x18] sm:$0xff]   ;;  %v697_v40 = vld [vmem:[#allocation10 + $0x20] sm:$0xff]   ;;  %v698_v41 = vld [vmem:[#allocation10 + $0x28] sm:$0xff]  }
  0x62   :  { %v166_v23 = vpack.i.b16 %v164_v21, %v164_v21  ;;  %v279_v42 = vld [vmem:[%s1042_s4] sm:$0x1]  ;;  %v699_v53 = vld [vmem:[#allocation10 + $0x30] sm:$0xff]   ;;  %v700_v54 = vld [vmem:[#allocation10 + $0x38] sm:$0xff]  }
  0x63   :  { %601 = vmatmul.mubr.msk.bf16.vlgmr.msra.gmra.mrb[0].mxu0 %vm118_vm1, %v101_v5  ;;  %v280_v43 = vpack.c.bf16 %v279_v42, %v279_v42  ;;  %v395_v55 = vld [vmem:[%s1044_s6] sm:$0x1]  ;;  %s851_s6 = smov [#allocation11]  }
  0x64   :  { %640 = vmatprep.mubr.msk.bf16.mxu0 %vm849_vm0, %v848_v0  ;;  %609 = vmatpush3.bf16.msra.mxu1 %v679_v7  ;;  %v171_v25 = vrot.slane %v166_v23, %v1001_v24  ;;  %v396_v56 = vpack.c.bf16 %v395_v55, %v395_v55  ;;  %s528_s11 = sshll.u32 %s851_s6, 4  ;;  %s529_s11 = int_to_ptr.vmem [resolvable:$true] %s528_s11 }
  0x65   :  { %610 = vmatprep.subr.bf16.mxu1 %v848_v0  ;;  %625 = vmatpush3.bf16.msra.mxu0 %v685_v13  ;;  %v282_v44 = vpack.i.b16 %v280_v43, %v280_v43  ;;  %s811_s12 = scalar_lea.vmem %s529_s11, 64  ;;  %p816_p13 = scmp.lt.s32.totalorder %s529_s11, %s529_s11 }
  0x66   :  { %626 = vmatprep.subr.bf16.mxu0 %v848_v0  ;;  %v398_v57 = vpack.i.b16 %v396_v56, %v396_v56  ;;  %p812_p12 = scmp.ne.s32.totalorder %s529_s11, %s811_s12  ;;  %p817_p0 = scmp.lt.s32.totalorder %s811_s12, %s811_s12 }
  0x67   :  { %v287_v45 = vrot.slane %v282_v44, %v1001_v24 }
  0x68   :  { %611 = vmatpush3.bf16.msra.mxu1 %v680_v8  ;;  %v403_v58 = vrot.slane %v398_v57, %v1001_v24  ;;  %p818_p1 = por %p817_p0, %p816_p13 }
  0x69   :  { %612 = vmatprep.subr.bf16.mxu1 %v848_v0  ;;  %627 = vmatpush3.bf16.msra.mxu0 %v686_v14 }
  0x6a   :  { %628 = vmatprep.subr.bf16.mxu0 %v848_v0  ;;  %p819_p2 = pnand %p818_p1, %p812_p12 }
  0x6c   :  { %613 = vmatpush3.bf16.msra.mxu1 %v681_v9 }
  0x6d   :  { %614 = vmatprep.subr.bf16.mxu1 %v848_v0  ;;  %629 = vmatpush3.bf16.msra.mxu0 %v687_v15 }
  0x6e   :  { %630 = vmatprep.subr.bf16.mxu0 %v848_v0 }
  0x70   :  { %615 = vmatpush3.bf16.msra.mxu1 %v682_v10 }
  0x71   :  { %616 = vmatprep.subr.bf16.mxu1 %v848_v0  ;;  %631 = vmatpush3.bf16.msra.mxu0 %v688_v16 }
  0x72   :  { %632 = vmatprep.subr.bf16.mxu0 %v848_v0 }
  0x74   :  { %617 = vmatpush3.bf16.msra.mxu1 %v683_v11 }
  0x75   :  { %618 = vmatprep.subr.bf16.mxu1 %v848_v0  ;;  %633 = vmatpush3.bf16.msra.mxu0 %v689_v17 }
  0x76   :  { %634 = vmatprep.subr.bf16.mxu0 %v848_v0 }
  0x78   :  { %619 = vmatpush3.bf16.msra.mxu1 %v684_v12 }
  0x79   :  { %644 = vmatprep.subr.bf16.mxu1 %v848_v0  ;;  %635 = vmatpush3.bf16.msra.mxu0 %v690_v18 }
  0x7a   :  { %636 = vmatprep.subr.bf16.mxu0 %v848_v0 }
  0x7d   :  { %637 = vmatpush3.bf16.msra.mxu0 %v691_v34 }
  0x7e   :  { %638 = vmatprep.subr.bf16.mxu0 %v848_v0 }
  0x81   :  { %639 = vmatpush3.bf16.msra.mxu0 %v692_v35 }
 0x136   :  { %v156_v26 = vpop.f32.mrb[0].mxu0 }
 0x137   :  { %v162_v27 = vpack.c.bf16 %v156_v26, %v156_v26  ;;  %v602_v28 = vpop.f32.mrb[1].mxu0 }
 0x138   :  { %v159_v29 = vpop.f32.mrb[2].mxu0 }
 0x139   :  { %v172_v30 = vadd.bf16 %v171_v25, %v162_v27  ;;  %v603_v31 = vpop.f32.mrb[3].mxu0 }
 0x13b   :  { %v173_v33 = vmax.bf16 %v850_v32, %v172_v30 }
 0x13d   :  { %621 = vmatmul.mubr.bf16.vlgmr.msra.gmra.mrb[0].mxu1 %v173_v33 }
 0x13e   :  { %660 = vmatprep.mubr.msk.bf16.mxu1 %vm849_vm0, %v848_v0  ;;  %645 = vmatpush3.bf16.msra.mxu1 %v693_v36 }
 0x13f   :  { %646 = vmatprep.subr.bf16.mxu1 %v848_v0 }
 0x142   :  { %647 = vmatpush3.bf16.msra.mxu1 %v694_v37 }
 0x143   :  { %648 = vmatprep.subr.bf16.mxu1 %v848_v0 }
 0x146   :  { %649 = vmatpush3.bf16.msra.mxu1 %v695_v38 }
 0x147   :  { %650 = vmatprep.subr.bf16.mxu1 %v848_v0 }
 0x14a   :  { %651 = vmatpush3.bf16.msra.mxu1 %v696_v39 }
 0x14b   :  { %652 = vmatprep.subr.bf16.mxu1 %v848_v0 }
 0x14e   :  { %653 = vmatpush3.bf16.msra.mxu1 %v697_v40 }
 0x14f   :  { %654 = vmatprep.subr.bf16.mxu1 %v848_v0 }
 0x152   :  { %655 = vmatpush3.bf16.msra.mxu1 %v698_v41 }
 0x153   :  { %656 = vmatprep.subr.bf16.mxu1 %v848_v0 }
 0x156   :  { %657 = vmatpush3.bf16.msra.mxu1 %v699_v53 }
 0x157   :  { %658 = vmatprep.subr.bf16.mxu1 %v848_v0  ;;  %v511_v0 = vld [vmem:[%s1046_s8] sm:$0x1] }
 0x158   :  { %v512_v3 = vpack.c.bf16 %v511_v0, %v511_v0 }
 0x15a   :  { %659 = vmatpush3.bf16.msra.mxu1 %v700_v54  ;;  %v514_v4 = vpack.i.b16 %v512_v3, %v512_v3 }
 0x15c   :  { %v519_v5 = vrot.slane %v514_v4, %v1001_v24 }
 0x210   :  { %v272_v46 = vpop.f32.mrb[0].mxu1 }
 0x211   :  { %v278_v47 = vpack.c.bf16 %v272_v46, %v272_v46  ;;  %v622_v48 = vpop.f32.mrb[1].mxu1 }
 0x212   :  { %v275_v49 = vpop.f32.mrb[2].mxu1 }
 0x213   :  { %v288_v50 = vadd.bf16 %v287_v45, %v278_v47  ;;  %v623_v51 = vpop.f32.mrb[3].mxu1 }
 0x215   :  { %v289_v52 = vmax.bf16 %v850_v32, %v288_v50 }
 0x217   :  { %641 = vmatmul.mubr.bf16.vlgmr.msra.gmra.mrb[4].mxu0 %v289_v52 }
 0x2ea   :  { %v388_v59 = vpop.f32.mrb[4].mxu0 }
 0x2eb   :  { %v394_v60 = vpack.c.bf16 %v388_v59, %v388_v59  ;;  %v642_v61 = vpop.f32.mrb[5].mxu0 }
 0x2ec   :  { %v391_v62 = vpop.f32.mrb[6].mxu0 }
 0x2ed   :  { %v404_v63 = vadd.bf16 %v403_v58, %v394_v60  ;;  %v643_v1 = vpop.f32.mrb[7].mxu0 }
 0x2ef   :  { %v405_v2 = vmax.bf16 %v850_v32, %v404_v63 }
 0x2f1   :  { %661 = vmatmul.mubr.bf16.vlgmr.msra.gmra.mrb[4].mxu1 %v405_v2 }
 0x3c4   :  { %v504_v6 = vpop.f32.mrb[4].mxu1 }
 0x3c5   :  { %v510_v7 = vpack.c.bf16 %v504_v6, %v504_v6  ;;  %v662_v8 = vpop.f32.mrb[5].mxu1 }
 0x3c6   :  { %v507_v9 = vpop.f32.mrb[6].mxu1 }
 0x3c7   :  { %v520_v10 = vadd.bf16 %v519_v5, %v510_v7  ;;  %v663_v11 = vpop.f32.mrb[7].mxu1 }
 0x3c9   :  { %521 = vst [vmem:[#allocation11] sm:$0xf] %v520_v10 }
 0x3ca   :  { %822 = shalt.err (!%p819_p2)
}
 0x3cb   :  { %s823_s1 = scalar_lea.hbm %s1047_s9, 64 }
 0x3cc   :  { %p824_p3 = scmp.ne.s32.totalorder %s1047_s9, %s823_s1  ;;  %p827_p4 = scmp.lt.u32.totalorder %s823_s1, %s1047_s9 }
 0x3ce   :  { %p829_p5 = pnand %p827_p4, %p824_p3 }
 0x3d0   :  { %832 = shalt.err (!%p829_p5)
}
 0x3d1   :  { %531 = dma.vmem_to_hbm [thread:$0]  %s529_s11, 64, %s1047_s9, [#allocation4]  }
 0x3d2   :  { %839 = dma.done.wait [#allocation4], 64  }
 0x3d3   :  { %840 = vsyncadd [#allocation4], 4294967232 }
 0x3d4   :  { %535 = vsyncpa [#allocation3], 1 }
 0x3d5   :  { %536 = vsyncpa [#allocation6], 1 }
 0x3d6   :  { %537 = vsyncpa [#allocation9], 1 }
 0x3d7   :  { %538 = vsyncpa [#allocation4], 1 }

</bundles_post_ra>
